<compile_context>
chip_gen: v5e
topology: v5e:2x2
jax: 0.10.0
libtpu: 0.0.40
codegen_flags: <defaults>
</compile_context>

<pallas_src>
import functools

import jax
import jax.numpy as jnp
from jax.experimental import pallas as pl
from jax.experimental.pallas import tpu as pltpu

LANE = 128       # lane tile
B_ALIGN = 16     # bf16 packs two rows per sublane -> 16-row-aligned batch blocks
MAX_B_BLK = 256


def _round_up(n, m):
    return (n + m - 1) // m * m


def char_rnn_kernel(emb_ref, wih_ref, whh_ref, bias_ref, wfc_ref, bfc_ref,
                    out_ref, h_ref, *, seq_len, padded_len, n_sub):
    """Grid = (batch_blocks [parallel], time_tiles [arbitrary, innermost]).

    emb_ref : (T_blk, B_blk, E_pad) bf16   time-major embeddings, current tile
    wih_ref : (E_pad, H_pad)        bf16   input->hidden  (pre-transposed)
    whh_ref : (H_pad, H_pad)        bf16   hidden->hidden (pre-transposed)
    bias_ref: (1, H_pad)            f32    b_ih + b_hh (fused)
    wfc_ref : (H_pad, V_pad)        bf16   fc weights (pre-transposed)
    bfc_ref : (1, V_pad)            f32
    out_ref : (B_blk, V_pad)        f32    logits for this batch block
    h_ref   : (B_blk, H_pad)        f32    hidden-state carry (VMEM scratch)
    """
    t_i = pl.program_id(1)

    @pl.when(t_i == 0)
    def _init():
        h_ref[...] = jnp.zeros_like(h_ref)

    t_blk, b_blk, e_pad = emb_ref.shape
    sub = b_blk // n_sub

    # Hoisted input projection: ONE MXU matmul for the whole time tile, with the
    # fused bias broadcast a single time.
    x_all = emb_ref[...].reshape(t_blk * b_blk, e_pad)                    # bf16
    x_proj = (jnp.dot(x_all, wih_ref[...],
                      preferred_element_type=jnp.float32)
              + bias_ref[...])                                            # f32

    whh = whh_ref[...]                        # bf16, loop-invariant
    h_carry = h_ref[...]                      # f32 carry
    hs = [h_carry[s * sub:(s + 1) * sub, :] for s in range(n_sub)]

    # Statically unrolled recurrence.  The n_sub batch sub-blocks are
    # independent chains, so the scheduler can overlap one chain's tanh (EUP)
    # with the other's MXU push inside each unrolled step.
    for t in range(t_blk):
        # Static: only the tail of the LAST tile can hold padded timesteps.
        is_pad_step = (padded_len - t_blk + t) >= seq_len
        new_hs = []
        for s in range(n_sub):
            row0 = t * b_blk + s * sub
            pre = x_proj[row0:row0 + sub, :] + jnp.dot(
                hs[s].astype(whh.dtype), whh,
                preferred_element_type=jnp.float32)
            h_new = jnp.tanh(pre)
            if is_pad_step:
                # Padded timesteps must not advance the hidden state; this
                # select is only emitted for the statically-padded tail steps.
                h_new = jnp.where(t_i * t_blk + t < seq_len, h_new, hs[s])
            new_hs.append(h_new)
        hs = new_hs

    h_out = hs[0] if n_sub == 1 else jnp.concatenate(hs, axis=0)
    h_ref[...] = h_out

    @pl.when(t_i == pl.num_programs(1) - 1)
    def _finalize():
        logits = (jnp.dot(h_out.astype(wfc_ref.dtype), wfc_ref[...],
                          preferred_element_type=jnp.float32)
                  + bfc_ref[...])
        out_ref[...] = logits.astype(out_ref.dtype)


def prepare_params(params):
    """One-time weight prep: transpose to (in, out), zero-pad to (8,128)-aligned
    shapes, cast matmul operands to bf16, append an all-zero 'padding token' row
    to the embedding table.  Done ONCE, not per forward call."""
    V, E = params["embedding"].shape
    H = params["w_hh"].shape[0]
    E_pad, H_pad, V_pad = (_round_up(E, LANE), _round_up(H, LANE),
                           _round_up(V, LANE))

    def pad2(a, r, c):
        return jnp.pad(a, ((0, r - a.shape[0]), (0, c - a.shape[1])))

    return {
        # Extra zero row at index V: padded token ids gather exact zeros, so a
        # single jnp.take produces the padded time-major activation directly.
        "emb_table": jnp.pad(params["embedding"],
                             ((0, 1), (0, E_pad - E))).astype(jnp.bfloat16),
        "w_ih": pad2(params["w_ih"].T, E_pad, H_pad).astype(jnp.bfloat16),
        "w_hh": pad2(params["w_hh"].T, H_pad, H_pad).astype(jnp.bfloat16),
        "w_fc": pad2(params["w_fc"].T, H_pad, V_pad).astype(jnp.bfloat16),
        "bias": jnp.pad((params["b_ih"] + params["b_hh"]).astype(jnp.float32),
                        (0, H_pad - H)).reshape(1, H_pad),
        "b_fc": jnp.pad(params["b_fc"].astype(jnp.float32),
                        (0, V_pad - V)).reshape(1, V_pad),
    }


@functools.partial(jax.jit, static_argnames=("vocab_size", "t_tile"))
def character_rnn_forward(x, prep, *, vocab_size, t_tile=32):
    """x: (B, T) int32 token ids. prep: output of prepare_params.
    Returns (B, vocab_size) float32 logits."""
    B, T = x.shape
    E_pad = prep["emb_table"].shape[1]
    H_pad = prep["w_hh"].shape[0]
    V_pad = prep["w_fc"].shape[1]
    pad_id = prep["emb_table"].shape[0] - 1      # the all-zero embedding row

    # ---- batch tiling: balanced, bf16-aligned (multiple-of-16) blocks ----
    n_b = -(-B // MAX_B_BLK)
    if B >= 64:
        n_b = max(n_b, 2)        # give both v7x TensorCores a batch block
    B_blk = _round_up(-(-B // n_b), B_ALIGN)
    B_pad = n_b * B_blk

    # ---- time tiling: prefer an exact divisor of T (no masking at all) ----
    # Cap t_blk * B_blk so the f32 x_proj temporary stays <= ~8 MiB (v7x VMEM).
    max_rows = max(B_blk, (2 * 1024 * 1024) // H_pad)
    t_cap = max(1, min(t_tile, max_rows // B_blk, T))
    t_blk = 1
    for d in range(1, t_cap + 1):
        if T % d == 0:
            t_blk = d
    if t_blk * 4 < t_cap:        # poor divisor (e.g. prime T): pad + mask last tile
        t_blk = t_cap
    T_pad = _round_up(T, t_blk)
    n_t = T_pad // t_blk

    # Two interleaved recurrence chains when the batch block is big enough for
    # each half to stay bf16-sublane-aligned (>= 16 rows each).
    n_sub = 2 if (B_blk % 32 == 0) else 1

    # Embedding gather straight into padded, time-major (T_pad, B_pad, E_pad)
    # layout: padded ids point at the all-zero table row (no second jnp.pad of
    # the activation).
    ids_tm = jnp.pad(x.T, ((0, T_pad - T), (0, B_pad - B)),
                     constant_values=pad_id)
    emb_tm = jnp.take(prep["emb_table"], ids_tm, axis=0)     # (T_pad,B_pad,E_pad)

    kernel = functools.partial(char_rnn_kernel, seq_len=T, padded_len=T_pad,
                               n_sub=n_sub)

    # NOTE: weights/biases below have constant index_maps; at char-RNN scales
    # their double-buffered VMEM footprint is negligible, so they are left on
    # the default pipelining path.
    out = pl.pallas_call(
        kernel,
        out_shape=jax.ShapeDtypeStruct((B_pad, V_pad), jnp.float32),
        grid=(n_b, n_t),
        in_specs=[
            pl.BlockSpec((t_blk, B_blk, E_pad), lambda b, t: (t, b, 0)),
            pl.BlockSpec((E_pad, H_pad), lambda b, t: (0, 0)),
            pl.BlockSpec((H_pad, H_pad), lambda b, t: (0, 0)),
            pl.BlockSpec((1, H_pad), lambda b, t: (0, 0)),
            pl.BlockSpec((H_pad, V_pad), lambda b, t: (0, 0)),
            pl.BlockSpec((1, V_pad), lambda b, t: (0, 0)),
        ],
        out_specs=pl.BlockSpec((B_blk, V_pad), lambda b, t: (b, 0)),
        scratch_shapes=[pltpu.VMEM((B_blk, H_pad), jnp.float32)],
        compiler_params=pltpu.CompilerParams(
            # Time axis MUST stay innermost + "arbitrary": the VMEM scratch
            # carries the hidden state across it.  Batch axis is independent.
            dimension_semantics=("parallel", "arbitrary"),
            vmem_limit_bytes=32 * 1024 * 1024,
        ),
    )(emb_tm, prep["w_ih"], prep["w_hh"], prep["bias"],
      prep["w_fc"], prep["b_fc"])

    return out[:B, :vocab_size]


def reference_forward(x, params):
    """Pure-JAX f32 reference mirroring the PyTorch forward."""
    embeds = jnp.take(params["embedding"], x, axis=0)          # (B, T, E)
    B = embeds.shape[0]
    H = params["w_hh"].shape[0]

    def step(h, x_t):
        h_new = jnp.tanh(x_t @ params["w_ih"].T + params["b_ih"]
                         + h @ params["w_hh"].T + params["b_hh"])
        return h_new, None

    h0 = jnp.zeros((B, H), jnp.float32)
    h_last, _ = jax.lax.scan(step, h0, jnp.transpose(embeds, (1, 0, 2)))
    return h_last @ params["w_fc"].T + params["b_fc"]


def init_params(key, vocab_size, embedding_dim, hidden_dim):
    """Deterministic synthetic parameter init (shapes match the torch module)."""
    ks = jax.random.split(key, 7)
    sh = 1.0 / jnp.sqrt(hidden_dim)
    return {
        "embedding": jax.random.normal(ks[0], (vocab_size, embedding_dim), jnp.float32),
        "w_ih": jax.random.uniform(ks[1], (hidden_dim, embedding_dim), jnp.float32, -sh, sh),
        "w_hh": jax.random.uniform(ks[2], (hidden_dim, hidden_dim), jnp.float32, -sh, sh),
        "b_ih": jax.random.uniform(ks[3], (hidden_dim,), jnp.float32, -sh, sh),
        "b_hh": jax.random.uniform(ks[4], (hidden_dim,), jnp.float32, -sh, sh),
        "w_fc": jax.random.uniform(ks[5], (vocab_size, hidden_dim), jnp.float32, -sh, sh),
        "b_fc": jax.random.uniform(ks[6], (vocab_size,), jnp.float32, -sh, sh),
    }


if __name__ == "__main__":
    # Small shapes consistent with the module's forward.
    B, T = 2, 8
    vocab_size, embedding_dim, hidden_dim = 64, 16, 32

    key = jax.random.PRNGKey(0)
    pkey, xkey = jax.random.split(key)
    params = init_params(pkey, vocab_size, embedding_dim, hidden_dim)
    x = jax.random.randint(xkey, (B, T), 0, vocab_size, dtype=jnp.int32)

    prep = prepare_params(params)                       # one-time weight prep
    logits = character_rnn_forward(x, prep, vocab_size=vocab_size)
    logits = jax.block_until_ready(logits)

    ref = jax.block_until_ready(reference_forward(x, params))
    assert logits.shape == (B, vocab_size)
    # Tolerance reflects bf16 matmul operands (f32 accumulation) vs f32 reference.
    # NOTE: bf16 rounding of h inside the recurrence compounds with T; validate
    # at the target sequence length if tighter accuracy is required.
    assert jnp.allclose(logits, ref, atol=3e-2, rtol=3e-2), "mismatch vs reference"

    print("KERNEL_OK")
</pallas_src>

<mosaic_0001>
module attributes {stable_mosaic.version = 11 : i64} {
  func.func @char_rnn_kernel(%arg0: i32, %arg1: i32, %arg2: memref<8x16x128xbf16, #tpu.memory_space<vmem>>, %arg3: memref<128x128xbf16, #tpu.memory_space<vmem>>, %arg4: memref<128x128xbf16, #tpu.memory_space<vmem>>, %arg5: memref<1x128xf32, #tpu.memory_space<vmem>>, %arg6: memref<128x128xbf16, #tpu.memory_space<vmem>>, %arg7: memref<1x128xf32, #tpu.memory_space<vmem>>, %arg8: memref<16x128xf32, #tpu.memory_space<vmem>>, %arg9: memref<16x128xf32, #tpu.memory_space<vmem>>) attributes {dimension_semantics = [#tpu.dimension_semantics<parallel>, #tpu.dimension_semantics<arbitrary>], iteration_bounds = array<i64: 1, 1>, scalar_prefetch = 0 : i64, scratch_operands = 1 : i64, tpu.core_type = #tpu.core_type<tc>, window_params = [{transform_indices = @transform_0, window_bounds = array<i64: 8, 16, 128>}, {pipeline_mode = #tpu.pipeline_mode<synchronous>, transform_indices = @transform_1, window_bounds = array<i64: 128, 128>}, {pipeline_mode = #tpu.pipeline_mode<synchronous>, transform_indices = @transform_2, window_bounds = array<i64: 128, 128>}, {pipeline_mode = #tpu.pipeline_mode<synchronous>, transform_indices = @transform_3, window_bounds = array<i64: 1, 128>}, {pipeline_mode = #tpu.pipeline_mode<synchronous>, transform_indices = @transform_4, window_bounds = array<i64: 128, 128>}, {pipeline_mode = #tpu.pipeline_mode<synchronous>, transform_indices = @transform_5, window_bounds = array<i64: 1, 128>}, {transform_indices = @transform_6, window_bounds = array<i64: 16, 128>}]} {
    %c0_i32 = arith.constant 0 : i32
    %0 = arith.cmpi eq, %arg1, %c0_i32 : i32
    %1 = arith.extui %0 : i1 to i32
    %c0_i32_0 = arith.constant 0 : i32
    %2 = arith.cmpi ne, %1, %c0_i32_0 : i32
    scf.if %2 {
      %cst_23 = arith.constant 0.000000e+00 : f32
      %56 = vector.broadcast %cst_23 : f32 to vector<16x128xf32>
      %c0_24 = arith.constant 0 : index
      %c0_25 = arith.constant 0 : index
      %57 = vector.load %arg9[%c0_24, %c0_25] : memref<16x128xf32, #tpu.memory_space<vmem>>, vector<16x128xf32>
      tpu.vector_store %arg9[%c0_24, %c0_25], %56 {strides = array<i32>} : memref<16x128xf32, #tpu.memory_space<vmem>>, vector<16x128xf32>,
    } else {
    }
    %c0 = arith.constant 0 : index
    %c0_1 = arith.constant 0 : index
    %c0_2 = arith.constant 0 : index
    %3 = vector.load %arg2[%c0, %c0_1, %c0_2] : memref<8x16x128xbf16, #tpu.memory_space<vmem>>, vector<8x16x128xbf16>
    %4 = vector.shape_cast %3 : vector<8x16x128xbf16> to vector<128x128xbf16>
    %c0_3 = arith.constant 0 : index
    %c0_4 = arith.constant 0 : index
    %5 = vector.load %arg3[%c0_3, %c0_4] : memref<128x128xbf16, #tpu.memory_space<vmem>>, vector<128x128xbf16>
    %cst = arith.constant dense<0.000000e+00> : vector<128x128xf32>
    %6 = tpu.matmul %4, %5, %cst {dimension_numbers = #tpu.dot_dimension_numbers<[1], [0], [0], [1], [0, 0, 1, 1], [], []>} : vector<128x128xbf16>, vector<128x128xbf16>, vector<128x128xf32> -> vector<128x128xf32>
    %c0_5 = arith.constant 0 : index
    %c0_6 = arith.constant 0 : index
    %7 = vector.load %arg5[%c0_5, %c0_6] : memref<1x128xf32, #tpu.memory_space<vmem>>, vector<1x128xf32>
    %8 = vector.broadcast %7 : vector<1x128xf32> to vector<128x128xf32>
    %9 = arith.addf %6, %8 : vector<128x128xf32>
    %c0_7 = arith.constant 0 : index
    %c0_8 = arith.constant 0 : index
    %10 = vector.load %arg4[%c0_7, %c0_8] : memref<128x128xbf16, #tpu.memory_space<vmem>>, vector<128x128xbf16>
    %c0_9 = arith.constant 0 : index
    %c0_10 = arith.constant 0 : index
    %11 = vector.load %arg9[%c0_9, %c0_10] : memref<16x128xf32, #tpu.memory_space<vmem>>, vector<16x128xf32>
    %12 = vector.extract_strided_slice %9 {offsets = [0, 0], sizes = [16, 128], strides = [1, 1]} : vector<128x128xf32> to vector<16x128xf32>
    %13 = arith.truncf %11 : vector<16x128xf32> to vector<16x128xbf16>
    %cst_11 = arith.constant dense<0.000000e+00> : vector<16x128xf32>
    %14 = tpu.matmul %13, %10, %cst_11 {dimension_numbers = #tpu.dot_dimension_numbers<[1], [0], [0], [1], [0, 0, 1, 1], [], []>} : vector<16x128xbf16>, vector<128x128xbf16>, vector<16x128xf32> -> vector<16x128xf32>
    %15 = arith.addf %12, %14 : vector<16x128xf32>
    %16 = math.tanh %15 : vector<16x128xf32>
    %17 = vector.extract_strided_slice %9 {offsets = [16, 0], sizes = [16, 128], strides = [1, 1]} : vector<128x128xf32> to vector<16x128xf32>
    %18 = arith.truncf %16 : vector<16x128xf32> to vector<16x128xbf16>
    %cst_12 = arith.constant dense<0.000000e+00> : vector<16x128xf32>
    %19 = tpu.matmul %18, %10, %cst_12 {dimension_numbers = #tpu.dot_dimension_numbers<[1], [0], [0], [1], [0, 0, 1, 1], [], []>} : vector<16x128xbf16>, vector<128x128xbf16>, vector<16x128xf32> -> vector<16x128xf32>
    %20 = arith.addf %17, %19 : vector<16x128xf32>
    %21 = math.tanh %20 : vector<16x128xf32>
    %22 = vector.extract_strided_slice %9 {offsets = [32, 0], sizes = [16, 128], strides = [1, 1]} : vector<128x128xf32> to vector<16x128xf32>
    %23 = arith.truncf %21 : vector<16x128xf32> to vector<16x128xbf16>
    %cst_13 = arith.constant dense<0.000000e+00> : vector<16x128xf32>
    %24 = tpu.matmul %23, %10, %cst_13 {dimension_numbers = #tpu.dot_dimension_numbers<[1], [0], [0], [1], [0, 0, 1, 1], [], []>} : vector<16x128xbf16>, vector<128x128xbf16>, vector<16x128xf32> -> vector<16x128xf32>
    %25 = arith.addf %22, %24 : vector<16x128xf32>
    %26 = math.tanh %25 : vector<16x128xf32>
    %27 = vector.extract_strided_slice %9 {offsets = [48, 0], sizes = [16, 128], strides = [1, 1]} : vector<128x128xf32> to vector<16x128xf32>
    %28 = arith.truncf %26 : vector<16x128xf32> to vector<16x128xbf16>
    %cst_14 = arith.constant dense<0.000000e+00> : vector<16x128xf32>
    %29 = tpu.matmul %28, %10, %cst_14 {dimension_numbers = #tpu.dot_dimension_numbers<[1], [0], [0], [1], [0, 0, 1, 1], [], []>} : vector<16x128xbf16>, vector<128x128xbf16>, vector<16x128xf32> -> vector<16x128xf32>
    %30 = arith.addf %27, %29 : vector<16x128xf32>
    %31 = math.tanh %30 : vector<16x128xf32>
    %32 = vector.extract_strided_slice %9 {offsets = [64, 0], sizes = [16, 128], strides = [1, 1]} : vector<128x128xf32> to vector<16x128xf32>
    %33 = arith.truncf %31 : vector<16x128xf32> to vector<16x128xbf16>
    %cst_15 = arith.constant dense<0.000000e+00> : vector<16x128xf32>
    %34 = tpu.matmul %33, %10, %cst_15 {dimension_numbers = #tpu.dot_dimension_numbers<[1], [0], [0], [1], [0, 0, 1, 1], [], []>} : vector<16x128xbf16>, vector<128x128xbf16>, vector<16x128xf32> -> vector<16x128xf32>
    %35 = arith.addf %32, %34 : vector<16x128xf32>
    %36 = math.tanh %35 : vector<16x128xf32>
    %37 = vector.extract_strided_slice %9 {offsets = [80, 0], sizes = [16, 128], strides = [1, 1]} : vector<128x128xf32> to vector<16x128xf32>
    %38 = arith.truncf %36 : vector<16x128xf32> to vector<16x128xbf16>
    %cst_16 = arith.constant dense<0.000000e+00> : vector<16x128xf32>
    %39 = tpu.matmul %38, %10, %cst_16 {dimension_numbers = #tpu.dot_dimension_numbers<[1], [0], [0], [1], [0, 0, 1, 1], [], []>} : vector<16x128xbf16>, vector<128x128xbf16>, vector<16x128xf32> -> vector<16x128xf32>
    %40 = arith.addf %37, %39 : vector<16x128xf32>
    %41 = math.tanh %40 : vector<16x128xf32>
    %42 = vector.extract_strided_slice %9 {offsets = [96, 0], sizes = [16, 128], strides = [1, 1]} : vector<128x128xf32> to vector<16x128xf32>
    %43 = arith.truncf %41 : vector<16x128xf32> to vector<16x128xbf16>
    %cst_17 = arith.constant dense<0.000000e+00> : vector<16x128xf32>
    %44 = tpu.matmul %43, %10, %cst_17 {dimension_numbers = #tpu.dot_dimension_numbers<[1], [0], [0], [1], [0, 0, 1, 1], [], []>} : vector<16x128xbf16>, vector<128x128xbf16>, vector<16x128xf32> -> vector<16x128xf32>
    %45 = arith.addf %42, %44 : vector<16x128xf32>
    %46 = math.tanh %45 : vector<16x128xf32>
    %47 = vector.extract_strided_slice %9 {offsets = [112, 0], sizes = [16, 128], strides = [1, 1]} : vector<128x128xf32> to vector<16x128xf32>
    %48 = arith.truncf %46 : vector<16x128xf32> to vector<16x128xbf16>
    %cst_18 = arith.constant dense<0.000000e+00> : vector<16x128xf32>
    %49 = tpu.matmul %48, %10, %cst_18 {dimension_numbers = #tpu.dot_dimension_numbers<[1], [0], [0], [1], [0, 0, 1, 1], [], []>} : vector<16x128xbf16>, vector<128x128xbf16>, vector<16x128xf32> -> vector<16x128xf32>
    %50 = arith.addf %47, %49 : vector<16x128xf32>
    %51 = math.tanh %50 : vector<16x128xf32>
    %c0_19 = arith.constant 0 : index
    %c0_20 = arith.constant 0 : index
    %52 = vector.load %arg9[%c0_19, %c0_20] : memref<16x128xf32, #tpu.memory_space<vmem>>, vector<16x128xf32>
    tpu.vector_store %arg9[%c0_19, %c0_20], %51 {strides = array<i32>} : memref<16x128xf32, #tpu.memory_space<vmem>>, vector<16x128xf32>,
    %c0_i32_21 = arith.constant 0 : i32
    %53 = arith.cmpi eq, %arg1, %c0_i32_21 : i32
    %54 = arith.extui %53 : i1 to i32
    %c0_i32_22 = arith.constant 0 : i32
    %55 = arith.cmpi ne, %54, %c0_i32_22 : i32
    scf.if %55 {
      %56 = arith.truncf %51 : vector<16x128xf32> to vector<16x128xbf16>
      %c0_23 = arith.constant 0 : index
      %c0_24 = arith.constant 0 : index
      %57 = vector.load %arg6[%c0_23, %c0_24] : memref<128x128xbf16, #tpu.memory_space<vmem>>, vector<128x128xbf16>
      %cst_25 = arith.constant dense<0.000000e+00> : vector<16x128xf32>
      %58 = tpu.matmul %56, %57, %cst_25 {dimension_numbers = #tpu.dot_dimension_numbers<[1], [0], [0], [1], [0, 0, 1, 1], [], []>} : vector<16x128xbf16>, vector<128x128xbf16>, vector<16x128xf32> -> vector<16x128xf32>
      %c0_26 = arith.constant 0 : index
      %c0_27 = arith.constant 0 : index
      %59 = vector.load %arg7[%c0_26, %c0_27] : memref<1x128xf32, #tpu.memory_space<vmem>>, vector<1x128xf32>
      %60 = vector.broadcast %59 : vector<1x128xf32> to vector<16x128xf32>
      %61 = arith.addf %58, %60 : vector<16x128xf32>
      %c0_28 = arith.constant 0 : index
      %c0_29 = arith.constant 0 : index
      %62 = vector.load %arg8[%c0_28, %c0_29] : memref<16x128xf32, #tpu.memory_space<vmem>>, vector<16x128xf32>
      tpu.vector_store %arg8[%c0_28, %c0_29], %61 {strides = array<i32>} : memref<16x128xf32, #tpu.memory_space<vmem>>, vector<16x128xf32>,
    } else {
    }
    return
  }
  func.func @transform_0(%arg0: i32, %arg1: i32) -> (i32, i32, i32) {
    %c0_i32 = arith.constant 0 : i32
    %c0_i32_0 = arith.constant 0 : i32
    return %arg1, %arg0, %c0_i32 : i32, i32, i32
  }
  func.func @transform_1(%arg0: i32, %arg1: i32) -> (i32, i32) {
    %c0_i32 = arith.constant 0 : i32
    %c0_i32_0 = arith.constant 0 : i32
    %c0_i32_1 = arith.constant 0 : i32
    return %c0_i32, %c0_i32_0 : i32, i32
  }
  func.func @transform_2(%arg0: i32, %arg1: i32) -> (i32, i32) {
    %c0_i32 = arith.constant 0 : i32
    %c0_i32_0 = arith.constant 0 : i32
    %c0_i32_1 = arith.constant 0 : i32
    return %c0_i32, %c0_i32_0 : i32, i32
  }
  func.func @transform_3(%arg0: i32, %arg1: i32) -> (i32, i32) {
    %c0_i32 = arith.constant 0 : i32
    %c0_i32_0 = arith.constant 0 : i32
    %c0_i32_1 = arith.constant 0 : i32
    return %c0_i32, %c0_i32_0 : i32, i32
  }
  func.func @transform_4(%arg0: i32, %arg1: i32) -> (i32, i32) {
    %c0_i32 = arith.constant 0 : i32
    %c0_i32_0 = arith.constant 0 : i32
    %c0_i32_1 = arith.constant 0 : i32
    return %c0_i32, %c0_i32_0 : i32, i32
  }
  func.func @transform_5(%arg0: i32, %arg1: i32) -> (i32, i32) {
    %c0_i32 = arith.constant 0 : i32
    %c0_i32_0 = arith.constant 0 : i32
    %c0_i32_1 = arith.constant 0 : i32
    return %c0_i32, %c0_i32_0 : i32, i32
  }
  func.func @transform_6(%arg0: i32, %arg1: i32) -> (i32, i32) {
    %c0_i32 = arith.constant 0 : i32
    %c0_i32_0 = arith.constant 0 : i32
    return %arg0, %c0_i32 : i32, i32
  }
}

</mosaic_0001>

<bundles_post_ra>
// kernel: character_rnn_forward.1
= control target key start
LH: loop header
LB: loop body
LE: loop exit
PB: predicated region body
PF: predicated region fallthrough
CT: control target
= control target key end

     0   :  { %v725_v19 = vmov 0.0|0.0   ;;  %s979_s1 = inlined_call_operand.vmem [shape: bf16[128,128], index: 1, kind: input, shape index: {}]   ;;  %s980_s2 = inlined_call_operand.vmem [shape: bf16[128,128], index: 2, kind: input, shape index: {}]   ;;  %s981_s3 = inlined_call_operand.vmem [shape: f32[1,128], index: 3, kind: input, shape index: {}]   ;;  %s982_s0 = inlined_call_operand.vmem [shape: bf16[8,16,128], index: 0, kind: input, shape index: {}]   ;;  %s983_s4 = inlined_call_operand.vmem [shape: bf16[128,128], index: 4, kind: input, shape index: {}]   ;;  %s984_s5 = inlined_call_operand.vmem [shape: f32[1,128], index: 5, kind: input, shape index: {}]   ;;  %s985_s6 = inlined_call_operand.vmem [shape: f32[16,128], index: 6, kind: output, shape index: {}]  }
   0x1   :  { %v665_v0 = vld [vmem:[%s979_s1 + $0x38] sm:$0xff]  ;;  %v664_v1 = vld [vmem:[%s979_s1 + $0x30] sm:$0xff]  ;;  %v663_v3 = vld [vmem:[%s979_s1 + $0x28] sm:$0xff] }
   0x2   :  { %682 = vmatpush.bf16.msra.mxu1 %v665_v0  ;;  %161 = vmatpush.bf16.msra.mxu0 %v665_v0  ;;  %v770_v2 = vld [vmem:[%s980_s2 + $0x38] sm:$0xff]  ;;  %v780_v4 = vld [vmem:[%s980_s2 + $0x30] sm:$0xff]  ;;  %v662_v5 = vld [vmem:[%s979_s1 + $0x20] sm:$0xff] }
   0x3   :  { %296 = vmatpush.bf16.msra.mxu2 %v770_v2  ;;  %315 = vmatpush.bf16.msra.mxu3 %v770_v2  ;;  %v790_v6 = vld [vmem:[%s980_s2 + $0x28] sm:$0xff]  ;;  %v661_v7 = vld [vmem:[%s979_s1 + $0x18] sm:$0xff]  ;;  %v800_v8 = vld [vmem:[%s980_s2 + $0x20] sm:$0xff] }
   0x4   :  { %v660_v9 = vld [vmem:[%s979_s1 + $0x10] sm:$0xff]  ;;  %v810_v10 = vld [vmem:[%s980_s2 + $0x18] sm:$0xff]  ;;  %v659_v11 = vld [vmem:[%s979_s1 + $0x8] sm:$0xff] }
   0x5   :  { %v820_v12 = vld [vmem:[%s980_s2 + $0x10] sm:$0xff]  ;;  %v658_v13 = vld [vmem:[%s979_s1] sm:$0xff]  ;;  %v830_v14 = vld [vmem:[%s980_s2 + $0x8] sm:$0xff] }
   0x6   :  { %683 = vmatpush.bf16.msra.mxu1 %v664_v1  ;;  %162 = vmatpush.bf16.msra.mxu0 %v664_v1  ;;  %v656_v15 = vld [vmem:[%s982_s0 + $0x30] sm:$0xff]  ;;  %v650_v16 = vld [vmem:[%s982_s0] sm:$0xff]  ;;  %v657_v18 = vld [vmem:[%s982_s0 + $0x38] sm:$0xff] }
   0x7   :  { %297 = vmatpush.bf16.msra.mxu2 %v780_v4  ;;  %316 = vmatpush.bf16.msra.mxu3 %v780_v4  ;;  %v844_v17 = vld [vmem:[%s980_s2] sm:$0xff]  ;;  %v651_v22 = vld [vmem:[%s982_s0 + $0x8] sm:$0xff]  ;;  %v652_v37 = vld [vmem:[%s982_s0 + $0x10] sm:$0xff] }
   0x8   :  { %v904_v26 = vld [vmem:[%s981_s3] ss:$0 sm:$0xff]  ;;  %v653_v49 = vld [vmem:[%s982_s0 + $0x18] sm:$0xff] }
   0x9   :  { %v654_v61 = vld [vmem:[%s982_s0 + $0x20] sm:$0xff] }
   0xa   :  { %684 = vmatpush.bf16.msra.mxu1 %v663_v3  ;;  %163 = vmatpush.bf16.msra.mxu0 %v663_v3 }
   0xb   :  { %298 = vmatpush.bf16.msra.mxu2 %v790_v6  ;;  %317 = vmatpush.bf16.msra.mxu3 %v790_v6 }
   0xe   :  { %685 = vmatpush.bf16.msra.mxu1 %v662_v5  ;;  %164 = vmatpush.bf16.msra.mxu0 %v662_v5 }
   0xf   :  { %299 = vmatpush.bf16.msra.mxu2 %v800_v8  ;;  %318 = vmatpush.bf16.msra.mxu3 %v800_v8 }
  0x12   :  { %686 = vmatpush.bf16.msra.mxu1 %v661_v7  ;;  %165 = vmatpush.bf16.msra.mxu0 %v661_v7 }
  0x13   :  { %300 = vmatpush.bf16.msra.mxu2 %v810_v10  ;;  %319 = vmatpush.bf16.msra.mxu3 %v810_v10 }
  0x16   :  { %687 = vmatpush.bf16.msra.mxu1 %v660_v9  ;;  %166 = vmatpush.bf16.msra.mxu0 %v660_v9  ;;  %v655_v9 = vld [vmem:[%s982_s0 + $0x28] sm:$0xff] }
  0x17   :  { %301 = vmatpush.bf16.msra.mxu2 %v820_v12  ;;  %320 = vmatpush.bf16.msra.mxu3 %v820_v12 }
  0x1a   :  { %688 = vmatpush.bf16.msra.mxu1 %v659_v11  ;;  %167 = vmatpush.bf16.msra.mxu0 %v659_v11 }
  0x1b   :  { %302 = vmatpush.bf16.msra.mxu2 %v830_v14  ;;  %321 = vmatpush.bf16.msra.mxu3 %v830_v14 }
  0x1e   :  { %689 = vmatpush.bf16.msra.mxu1 %v658_v13  ;;  %168 = vmatpush.bf16.msra.mxu0 %v658_v13 }
  0x1f   :  { %303 = vmatpush.bf16.msra.mxu2 %v844_v17  ;;  %322 = vmatpush.bf16.msra.mxu3 %v844_v17 }
  0x21   :  { %199 = vmatmul.bf16.vlgmr.msra.gmra.mxu1 %v656_v15  ;;  %169 = vmatmul.bf16.vlgmr.msra.gmra.mxu0 %v650_v16 }
  0x22   :  { %277 = vmatpush.bf16.msrb.mxu1 %v770_v2 }
  0x23   :  { %353 = vmatpush.bf16.msrb.mxu2 %v770_v2  ;;  %372 = vmatpush.bf16.msrb.mxu3 %v770_v2 }
  0x26   :  { %278 = vmatpush.bf16.msrb.mxu1 %v780_v4 }
  0x27   :  { %354 = vmatpush.bf16.msrb.mxu2 %v780_v4  ;;  %373 = vmatpush.bf16.msrb.mxu3 %v780_v4 }
  0x2a   :  { %279 = vmatpush.bf16.msrb.mxu1 %v790_v6 }
  0x2b   :  { %355 = vmatpush.bf16.msrb.mxu2 %v790_v6  ;;  %374 = vmatpush.bf16.msrb.mxu3 %v790_v6 }
  0x2e   :  { %280 = vmatpush.bf16.msrb.mxu1 %v800_v8 }
  0x2f   :  { %356 = vmatpush.bf16.msrb.mxu2 %v800_v8  ;;  %375 = vmatpush.bf16.msrb.mxu3 %v800_v8 }
  0x31   :  { %204 = vmatmul.bf16.gmra.mxu1 %v657_v18  ;;  %174 = vmatmul.bf16.gmra.mxu0 %v651_v22 }
  0x32   :  { %281 = vmatpush.bf16.msrb.mxu1 %v810_v10 }
  0x33   :  { %357 = vmatpush.bf16.msrb.mxu2 %v810_v10  ;;  %376 = vmatpush.bf16.msrb.mxu3 %v810_v10 }
  0x36   :  { %282 = vmatpush.bf16.msrb.mxu1 %v820_v12 }
  0x37   :  { %358 = vmatpush.bf16.msrb.mxu2 %v820_v12  ;;  %377 = vmatpush.bf16.msrb.mxu3 %v820_v12 }
  0x3a   :  { %283 = vmatpush.bf16.msrb.mxu1 %v830_v14 }
  0x3b   :  { %359 = vmatpush.bf16.msrb.mxu2 %v830_v14  ;;  %378 = vmatpush.bf16.msrb.mxu3 %v830_v14 }
  0x3e   :  { %284 = vmatpush.bf16.msrb.mxu1 %v844_v17 }
  0x3f   :  { %360 = vmatpush.bf16.msrb.mxu2 %v844_v17  ;;  %379 = vmatpush.bf16.msrb.mxu3 %v844_v17 }
  0x41   :  { %285 = vmatmul.bf16.vlgmr.msrb.gmra.mxu1 %v725_v19  ;;  %179 = vmatmul.bf16.gmra.mxu0 %v652_v37  ;;  %v681_v37 = vld [vmem:[%s983_s4 + $0x38] sm:$0xff] }
  0x42   :  { %334 = vmatpush.bf16.msra.mxu1 %v770_v2 }
  0x46   :  { %335 = vmatpush.bf16.msra.mxu1 %v780_v4 }
  0x4a   :  { %336 = vmatpush.bf16.msra.mxu1 %v790_v6 }
  0x4e   :  { %337 = vmatpush.bf16.msra.mxu1 %v800_v8 }
  0x51   :  { %184 = vmatmul.bf16.gmra.mxu0 %v653_v49  ;;  %v678_v49 = vld [vmem:[%s983_s4 + $0x20] sm:$0xff] }
  0x52   :  { %338 = vmatpush.bf16.msra.mxu1 %v810_v10 }
  0x56   :  { %339 = vmatpush.bf16.msra.mxu1 %v820_v12 }
  0x5a   :  { %340 = vmatpush.bf16.msra.mxu1 %v830_v14 }
  0x5e   :  { %341 = vmatpush.bf16.msra.mxu1 %v844_v17 }
  0x61   :  { %189 = vmatmul.bf16.gmra.mxu0 %v654_v61  ;;  %v692_v61 = vld [vmem:[%s984_s5] ss:$0 sm:$0xff] }
  0x62   :  { %391 = vmatpush.bf16.msrb.mxu1 %v770_v2 }
  0x66   :  { %392 = vmatpush.bf16.msrb.mxu1 %v780_v4 }
  0x6a   :  { %393 = vmatpush.bf16.msrb.mxu1 %v790_v6 }
  0x6e   :  { %394 = vmatpush.bf16.msrb.mxu1 %v800_v8 }
  0x71   :  { %194 = vmatmul.bf16.gmra.mxu0 %v655_v9 }
  0x72   :  { %395 = vmatpush.bf16.msrb.mxu1 %v810_v10 }
  0x76   :  { %396 = vmatpush.bf16.msrb.mxu1 %v820_v12 }
  0x7a   :  { %397 = vmatpush.bf16.msrb.mxu1 %v830_v14 }
  0x7e   :  { %398 = vmatpush.bf16.msrb.mxu1 %v844_v17 }
  0x9e   :  { %v890_v20 = vpop.f32.mrf.mxu1  ;;  %v170_v25 = vpop.f32.mrf.mxu0 }
  0x9f   :  { %v171_v28 = vadd.f32 %v904_v26, %v170_v25 }
  0xa6   :  { %v892_v21 = vpop.f32.mrf.mxu1  ;;  %v172_v29 = vpop.f32.mrf.mxu0 }
  0xa7   :  { %v173_v31 = vadd.f32 %v904_v26, %v172_v29 }
  0xae   :  { %v897_v23 = vpop.f32.mrf.mxu1  ;;  %v175_v38 = vpop.f32.mrf.mxu0 }
  0xaf   :  { %v176_v40 = vadd.f32 %v904_v26, %v175_v38  ;;  %v680_v38 = vld [vmem:[%s983_s4 + $0x30] sm:$0xff] }
  0xb6   :  { %v899_v24 = vpop.f32.mrf.mxu1  ;;  %v177_v41 = vpop.f32.mrf.mxu0 }
  0xb7   :  { %v178_v43 = vadd.f32 %v904_v26, %v177_v41  ;;  %v201_v41 = vadd.f32 %v904_v26, %v890_v20  ;;  %v677_v20 = vld [vmem:[%s983_s4 + $0x18] sm:$0xff] }
  0xbe   :  { %v286_v27 = vpop.f32.mrf.mxu1  ;;  %v180_v50 = vpop.f32.mrf.mxu0 }
  0xbf   :  { %v291_v30 = vadd.f32 %v286_v27, %v171_v28  ;;  %v181_v52 = vadd.f32 %v904_v26, %v180_v50  ;;  %v675_v50 = vld [vmem:[%s983_s4 + $0x8] sm:$0xff] }
  0xc1   :  { %693 = vtanh.f32 %v291_v30 }
  0xc6   :  { %v288_v32 = vpop.f32.mrf.mxu1  ;;  %v182_v53 = vpop.f32.mrf.mxu0 }
  0xc7   :  { %v292_v33 = vadd.f32 %v288_v32, %v173_v31  ;;  %v694_v34 = vpop.eup %693  ;;  %v183_v55 = vadd.f32 %v904_v26, %v182_v53  ;;  %v206_v53 = vadd.f32 %v904_v26, %v897_v23 }
  0xc9   :  { %695 = vtanh.f32 %v292_v33 }
  0xce   :  { %v185_v62 = vpop.f32.mrf.mxu0 }
  0xcf   :  { %v696_v35 = vpop.eup %695  ;;  %v186_v0 = vadd.f32 %v904_v26, %v185_v62 }
  0xd0   :  { %v295_v36 = vpack.c.bf16 %v696_v35, %v694_v34 }
  0xd2   :  { %304 = vmatmul.bf16.vlgmr.msra.gmra.mxu2 %v295_v36 }
  0xd3   :  { %410 = vmatpush.bf16.msra.mxu2 %v770_v2 }
  0xd6   :  { %v187_v1 = vpop.f32.mrf.mxu0 }
  0xd7   :  { %411 = vmatpush.bf16.msra.mxu2 %v780_v4  ;;  %v188_v3 = vadd.f32 %v904_v26, %v187_v1 }
  0xdb   :  { %412 = vmatpush.bf16.msra.mxu2 %v790_v6 }
  0xdf   :  { %413 = vmatpush.bf16.msra.mxu2 %v800_v8 }
  0xe3   :  { %414 = vmatpush.bf16.msra.mxu2 %v810_v10  ;;  %v190_v10 = vpop.f32.mrf.mxu0 }
  0xe7   :  { %415 = vmatpush.bf16.msra.mxu2 %v820_v12  ;;  %v191_v12 = vadd.f32 %v904_v26, %v190_v10 }
  0xeb   :  { %416 = vmatpush.bf16.msra.mxu2 %v830_v14  ;;  %v192_v13 = vpop.f32.mrf.mxu0 }
  0xec   :  { %v193_v15 = vadd.f32 %v904_v26, %v192_v13 }
  0xef   :  { %417 = vmatpush.bf16.msra.mxu2 %v844_v17 }
  0xf3   :  { %v195_v25 = vpop.f32.mrf.mxu0 }
  0xf4   :  { %v196_v28 = vadd.f32 %v904_v26, %v195_v25 }
  0xfb   :  { %v197_v29 = vpop.f32.mrf.mxu0 }
  0xfc   :  { %v198_v31 = vadd.f32 %v904_v26, %v197_v29 }
 0x155   :  { %v305_v39 = vpop.f32.mrf.mxu2 }
 0x156   :  { %v310_v42 = vadd.f32 %v305_v39, %v176_v40  ;;  %v679_v39 = vld [vmem:[%s983_s4 + $0x28] sm:$0xff] }
 0x158   :  { %697 = vtanh.f32 %v310_v42 }
 0x15d   :  { %v307_v44 = vpop.f32.mrf.mxu2 }
 0x15e   :  { %v311_v45 = vadd.f32 %v307_v44, %v178_v43  ;;  %v698_v46 = vpop.eup %697  ;;  %v203_v43 = vadd.f32 %v904_v26, %v892_v21  ;;  %v676_v21 = vld [vmem:[%s983_s4 + $0x10] sm:$0xff] }
 0x160   :  { %699 = vtanh.f32 %v311_v45 }
 0x166   :  { %v700_v47 = vpop.eup %699 }
 0x167   :  { %v314_v48 = vpack.c.bf16 %v700_v47, %v698_v46 }
 0x169   :  { %323 = vmatmul.bf16.vlgmr.msra.gmra.mxu3 %v314_v48 }
 0x16a   :  { %502 = vmatpush.bf16.msra.mxu3 %v681_v37 }
 0x16e   :  { %503 = vmatpush.bf16.msra.mxu3 %v680_v38 }
 0x172   :  { %504 = vmatpush.bf16.msra.mxu3 %v679_v39 }
 0x176   :  { %505 = vmatpush.bf16.msra.mxu3 %v678_v49 }
 0x17a   :  { %506 = vmatpush.bf16.msra.mxu3 %v677_v20 }
 0x17e   :  { %507 = vmatpush.bf16.msra.mxu3 %v676_v21 }
 0x182   :  { %508 = vmatpush.bf16.msra.mxu3 %v675_v50 }
 0x1ec   :  { %v324_v51 = vpop.f32.mrf.mxu3 }
 0x1ed   :  { %v329_v54 = vadd.f32 %v324_v51, %v181_v52  ;;  %v674_v51 = vld [vmem:[%s983_s4] sm:$0xff] }
 0x1ee   :  { %509 = vmatpush.bf16.msra.mxu3 %v674_v51 }
 0x1ef   :  { %701 = vtanh.f32 %v329_v54 }
 0x1f4   :  { %v326_v56 = vpop.f32.mrf.mxu3 }
 0x1f5   :  { %v330_v57 = vadd.f32 %v326_v56, %v183_v55  ;;  %v702_v58 = vpop.eup %701  ;;  %v208_v55 = vadd.f32 %v904_v26, %v899_v24 }
 0x1f7   :  { %703 = vtanh.f32 %v330_v57 }
 0x1fd   :  { %v704_v59 = vpop.eup %703 }
 0x1fe   :  { %v333_v60 = vpack.c.bf16 %v704_v59, %v702_v58 }
 0x200   :  { %342 = vmatmul.bf16.vlgmr.msra.gmra.mxu1 %v333_v60 }
 0x27d   :  { %v343_v63 = vpop.f32.mrf.mxu1 }
 0x27e   :  { %v348_v2 = vadd.f32 %v343_v63, %v186_v0 }
 0x280   :  { %705 = vtanh.f32 %v348_v2 }
 0x285   :  { %v345_v4 = vpop.f32.mrf.mxu1 }
 0x286   :  { %v349_v5 = vadd.f32 %v345_v4, %v188_v3  ;;  %v706_v6 = vpop.eup %705 }
 0x288   :  { %707 = vtanh.f32 %v349_v5 }
 0x28e   :  { %v708_v7 = vpop.eup %707 }
 0x28f   :  { %v352_v8 = vpack.c.bf16 %v708_v7, %v706_v6 }
 0x291   :  { %361 = vmatmul.bf16.vlgmr.msrb.gmra.mxu2 %v352_v8 }
 0x314   :  { %v362_v11 = vpop.f32.mrf.mxu2 }
 0x315   :  { %v367_v14 = vadd.f32 %v362_v11, %v191_v12 }
 0x317   :  { %709 = vtanh.f32 %v367_v14 }
 0x31c   :  { %v364_v16 = vpop.f32.mrf.mxu2 }
 0x31d   :  { %v368_v17 = vadd.f32 %v364_v16, %v193_v15  ;;  %v710_v18 = vpop.eup %709 }
 0x31f   :  { %711 = vtanh.f32 %v368_v17 }
 0x325   :  { %v712_v19 = vpop.eup %711 }
 0x326   :  { %v371_v22 = vpack.c.bf16 %v712_v19, %v710_v18 }
 0x328   :  { %380 = vmatmul.bf16.vlgmr.msrb.gmra.mxu3 %v371_v22 }
 0x3ab   :  { %v381_v27 = vpop.f32.mrf.mxu3 }
 0x3ac   :  { %v386_v30 = vadd.f32 %v381_v27, %v196_v28 }
 0x3ae   :  { %713 = vtanh.f32 %v386_v30 }
 0x3b3   :  { %v383_v32 = vpop.f32.mrf.mxu3 }
 0x3b4   :  { %v387_v33 = vadd.f32 %v383_v32, %v198_v31  ;;  %v714_v34 = vpop.eup %713 }
 0x3b6   :  { %715 = vtanh.f32 %v387_v33 }
 0x3bc   :  { %v716_v35 = vpop.eup %715 }
 0x3bd   :  { %v390_v36 = vpack.c.bf16 %v716_v35, %v714_v34 }
 0x3bf   :  { %399 = vmatmul.bf16.vlgmr.msrb.gmra.mxu1 %v390_v36 }
 0x43c   :  { %v400_v40 = vpop.f32.mrf.mxu1 }
 0x43d   :  { %v405_v42 = vadd.f32 %v400_v40, %v201_v41 }
 0x43f   :  { %717 = vtanh.f32 %v405_v42 }
 0x444   :  { %v402_v44 = vpop.f32.mrf.mxu1 }
 0x445   :  { %v406_v45 = vadd.f32 %v402_v44, %v203_v43  ;;  %v718_v46 = vpop.eup %717 }
 0x447   :  { %719 = vtanh.f32 %v406_v45 }
 0x44d   :  { %v720_v47 = vpop.eup %719 }
 0x44e   :  { %v409_v48 = vpack.c.bf16 %v720_v47, %v718_v46 }
 0x450   :  { %418 = vmatmul.bf16.vlgmr.msra.gmra.mxu2 %v409_v48 }
 0x4d3   :  { %v419_v52 = vpop.f32.mrf.mxu2 }
 0x4d4   :  { %v424_v54 = vadd.f32 %v419_v52, %v206_v53 }
 0x4d6   :  { %721 = vtanh.f32 %v424_v54 }
 0x4db   :  { %v421_v56 = vpop.f32.mrf.mxu2 }
 0x4dc   :  { %v425_v57 = vadd.f32 %v421_v56, %v208_v55  ;;  %v722_v58 = vpop.eup %721 }
 0x4de   :  { %723 = vtanh.f32 %v425_v57 }
 0x4e4   :  { %v724_v59 = vpop.eup %723 }
 0x4e5   :  { %v433_v60 = vpack.c.bf16 %v724_v59, %v722_v58 }
 0x4e7   :  { %510 = vmatmul.bf16.vlgmr.msra.gmra.mxu3 %v433_v60 }
 0x56a   :  { %v511_v62 = vpop.f32.mrf.mxu3 }
 0x56b   :  { %v512_v63 = vadd.f32 %v692_v61, %v511_v62 }
 0x56d   :  { %516 = vst [vmem:[%s985_s6] sm:$0xff] %v512_v63 }
 0x572   :  { %v513_v23 = vpop.f32.mrf.mxu3 }
 0x573   :  { %v514_v24 = vadd.f32 %v692_v61, %v513_v23 }
 0x575   :  { %517 = vst [vmem:[%s985_s6 + $0x8] sm:$0xff] %v514_v24 }

</bundles_post_ra>
